<compile_context>
chip_gen: v5e
topology: v5e:2x2
jax: 0.10.0
libtpu: 0.0.40
codegen_flags: <defaults>
</compile_context>

<pallas_src>
import numpy as np
import jax
import jax.numpy as jnp
from jax.experimental import pallas as pl
from jax.experimental.pallas import tpu as pltpu


def _round_up(x: int, m: int) -> int:
    return ((x + m - 1) // m) * m


# ----------------------------------------------------------------------------
# Geometry: build the (transposed) projection matrix  W_t = P.T  [H*W, A*D]
# ----------------------------------------------------------------------------
def build_radon_matrix_t(img_size: int, angles: np.ndarray, n_samples: int | None = None) -> np.ndarray:
    """Transposed dense parallel-beam projection matrix: sino_flat = img_flat @ W_t.

    Volume occupies [-0.5, 0.5]^2 (physical size 1), detector has img_size bins over size 1.
    Ray-driven line integral with bilinear interpolation.  Returns float32 [H*W, A*D].
    """
    # TODO(synk): for production sizes (size=256, angle=180) the dense f32 matrix is ~11 GiB of
    # host RAM; build it block-sparse per angle instead of dense when scaling this up.
    H = W = D = img_size
    A = len(angles)
    if n_samples is None:
        n_samples = 2 * img_size
    det_pos = (np.arange(D) + 0.5) / D - 0.5          # detector bin centers in [-0.5, 0.5]
    u = np.linspace(-0.75, 0.75, n_samples)            # samples along the ray (covers diagonal)
    du = u[1] - u[0]
    Wt = np.zeros((H * W, A * D), dtype=np.float32)

    for a, th in enumerate(angles):
        nx, ny = np.cos(th), np.sin(th)                # detector axis direction (x, y)
        rx, ry = -np.sin(th), np.cos(th)               # ray direction (x, y)
        px = det_pos[:, None] * nx + u[None, :] * rx   # [D, S]
        py = det_pos[:, None] * ny + u[None, :] * ry
        fj = (px + 0.5) * W - 0.5                      # fractional pixel coords
        fi = (py + 0.5) * H - 0.5
        j0 = np.floor(fj).astype(np.int64)
        i0 = np.floor(fi).astype(np.int64)
        tj = fj - j0
        ti = fi - i0
        rows = np.broadcast_to((a * D + np.arange(D))[:, None], fi.shape)
        for di, dj, wgt in ((0, 0, (1 - ti) * (1 - tj)),
                            (0, 1, (1 - ti) * tj),
                            (1, 0, ti * (1 - tj)),
                            (1, 1, ti * tj)):
            ii = i0 + di
            jj = j0 + dj
            valid = (ii >= 0) & (ii < H) & (jj >= 0) & (jj < W)
            cols = ii * W + jj
            contrib = (wgt * du).astype(np.float32)
            np.add.at(Wt, (cols[valid], rows[valid]), contrib[valid])
    return Wt


# ----------------------------------------------------------------------------
# Pallas kernel: block-CSR streaming matmul
#   out[M, N_pad] (f32, unscaled) = x[M, K_pad] (bf16) @ Wq (int8 blocks, dequant in-kernel)
# grid = (N tiles, max #stored K-blocks per N tile), K innermost (reduction).
# ----------------------------------------------------------------------------
def _proj_matmul_kernel(slot_ref, kblk_ref, cnt_ref, x_ref, w_ref, o_ref):
    # slot_ref  [nn, max_nnz] int32 (SMEM): compacted weight-block slot per (n, k) step
    # kblk_ref  [nn, max_nnz] int32 (SMEM): original K-block index (for slicing resident x)
    # cnt_ref   [nn]          int32 (SMEM): number of real blocks for this N tile
    # x_ref     [nk, M, tk]   bf16  (VMEM, fully resident): flattened padded image
    # w_ref     [1, tk, tn]   int8  (VMEM): one contiguous quantized weight block
    # o_ref     [M, tn]       f32   (VMEM): output block == accumulator (index map ignores k)
    n = pl.program_id(0)
    k = pl.program_id(1)

    @pl.when(k == 0)
    def _():
        o_ref[...] = jnp.zeros_like(o_ref)

    # Padded steps (k >= count) repeat the previous slot index in slot_ref, so no new weight
    # DMA is issued and the MXU work is skipped.  NOTE: this relies on k being the innermost
    # grid axis — do not reorder the grid.
    @pl.when(k < cnt_ref[n])
    def _():
        xb = x_ref[kblk_ref[n, k]]                         # (M, tk) bf16, dynamic leading index
        wb = w_ref[0].astype(jnp.bfloat16)                  # int8 -> bf16 is exact for |q| <= 127
        o_ref[...] += jnp.dot(xb, wb, preferred_element_type=jnp.float32)


def projection_matmul(slot_tbl, kblk_tbl, counts, x3, w_blocks, *,
                      tn, n_pad, num_n_tiles, max_nnz):
    """x3: [nk, M, tk] bf16 (resident), w_blocks: [NB, tk, tn] int8 -> [M, n_pad] f32 (unscaled)."""
    nk, M, tk = x3.shape
    nb = w_blocks.shape[0]
    grid = (num_n_tiles, max_nnz)

    # index_maps receive (grid indices..., *scalar_prefetch_refs)
    x_spec = pl.BlockSpec((nk, M, tk), lambda n, k, slot, kblk, cnt: (0, 0, 0))
    w_spec = pl.BlockSpec((1, tk, tn), lambda n, k, slot, kblk, cnt: (slot[n, k], 0, 0))
    o_spec = pl.BlockSpec((M, tn), lambda n, k, slot, kblk, cnt: (0, n))

    flops = 2 * M * tk * tn * nb
    bytes_accessed = nb * tk * tn + nk * M * tk * 2 + M * n_pad * 4   # int8 W dominates

    return pl.pallas_call(
        _proj_matmul_kernel,
        out_shape=jax.ShapeDtypeStruct((M, n_pad), jnp.float32),
        grid_spec=pltpu.PrefetchScalarGridSpec(
            num_scalar_prefetch=3,                 # slot / kblk / counts tables live in SMEM
            grid=grid,
            in_specs=[x_spec, w_spec],
            out_specs=o_spec,
        ),
        compiler_params=pltpu.CompilerParams(
            dimension_semantics=("parallel", "arbitrary"),   # N tiles parallel (v7x 2 TCs), K reduction
            vmem_limit_bytes=40 * 1024 * 1024,               # ~20 MiB used; safe on v5e/v6e/v7x
        ),
        cost_estimate=pl.CostEstimate(flops=flops, transcendentals=0,
                                      bytes_accessed=bytes_accessed),
    )(slot_tbl, kblk_tbl, counts, x3, w_blocks)


# ----------------------------------------------------------------------------
# Module wrapper (mirrors Radon2D.__init__ / forward)
# ----------------------------------------------------------------------------
class Radon2DPallas:
    TK = 2048          # K-block tile (input pixels)
    TN = 2048          # N tile (angle*detector). int8 weight block = 4 MiB -> 8 MiB double-buffered.

    def __init__(self, size: int = 256, angle=180):
        self.img_size = size
        if isinstance(angle, (int, np.integer)):
            angles = np.linspace(0.0, np.pi, int(angle), endpoint=False)   # tomosipo int convention
        else:
            angles = np.asarray(angle, dtype=np.float64)
        self.angles = angles
        self.num_angles = len(angles)

        K = size * size
        N = self.num_angles * size
        self.K, self.N = K, N

        tk = self.TK if K >= self.TK else _round_up(K, 128)
        tn = self.TN if N >= self.TN else _round_up(N, 128)
        K_pad = _round_up(K, tk)
        N_pad = _round_up(N, tn)
        nk = K_pad // tk
        nn = N_pad // tn
        if nn % 2 == 1:                    # even #N-tiles -> balanced megacore split on v7x
            nn += 1
            N_pad += tn
        self.tk, self.tn = tk, tn
        self.K_pad, self.N_pad = K_pad, N_pad
        self.nk, self.nn = nk, nn

        # ---- build operator, quantize per output column (ray) to int8 ----
        w_t = build_radon_matrix_t(size, angles)                          # [K, N] f32, nonnegative
        col_max = np.abs(w_t).max(axis=0)
        col_scale = np.where(col_max > 0, col_max / 127.0, 1.0).astype(np.float32)   # [N]
        w_q = np.clip(np.rint(w_t / col_scale[None, :]), 0, 127).astype(np.int8)     # [K, N]

        wq_pad = np.zeros((K_pad, N_pad), dtype=np.int8)
        wq_pad[:K, :N] = w_q

        # ---- pack block-CSR: only nonzero (tk, tn) blocks, contiguous in HBM ----
        blocks = wq_pad.reshape(nk, tk, nn, tn).transpose(2, 0, 1, 3)     # [nn, nk, tk, tn]
        nz = (blocks != 0).any(axis=(2, 3))                               # [nn, nk]
        counts = nz.sum(axis=1).astype(np.int32)                          # [nn]
        max_nnz = max(int(counts.max()), 1)
        slot_tbl = np.zeros((nn, max_nnz), dtype=np.int32)
        kblk_tbl = np.zeros((nn, max_nnz), dtype=np.int32)
        packed = []
        for n in range(nn):
            ks = np.nonzero(nz[n])[0]
            for j, kb in enumerate(ks):
                slot_tbl[n, j] = len(packed)
                kblk_tbl[n, j] = int(kb)
                packed.append(blocks[n, kb])
            if len(ks) == 0:
                slot_tbl[n, :] = 0
                kblk_tbl[n, :] = 0
            else:
                # pad by repeating the last slot -> no extra DMA on padded k-steps
                slot_tbl[n, len(ks):] = slot_tbl[n, len(ks) - 1]
                kblk_tbl[n, len(ks):] = kblk_tbl[n, len(ks) - 1]
        if not packed:
            packed.append(np.zeros((tk, tn), dtype=np.int8))
        w_blocks = np.stack(packed, axis=0)                               # [NB, tk, tn] int8

        self.max_nnz = max_nnz
        self.slot_tbl = jnp.asarray(slot_tbl)          # SMEM scalar-prefetch tables (int32)
        self.kblk_tbl = jnp.asarray(kblk_tbl)
        self.counts = jnp.asarray(counts)
        self.w_blocks = jnp.asarray(w_blocks)          # int8 weight stream (half the bytes of bf16)
        col_scale_pad = np.ones((N_pad,), dtype=np.float32)
        col_scale_pad[:N] = col_scale
        self.col_scale = jnp.asarray(col_scale_pad)    # dequant scale applied outside the kernel

    def forward(self, img: jax.Array) -> jax.Array:
        """img: [B, H, W] float -> sinogram [B, A, D] float32."""
        B, H, Wd = img.shape
        assert H == self.img_size and Wd == self.img_size
        M = max(16, _round_up(B, 16))                       # full bf16 (16,128) sublane tiles
        x = img.reshape(B, H * Wd).astype(jnp.bfloat16)
        x_pad = jnp.zeros((M, self.K_pad), dtype=jnp.bfloat16).at[:B, :self.K].set(x)
        x3 = x_pad.reshape(M, self.nk, self.tk).transpose(1, 0, 2)        # [nk, M, tk], VMEM-resident
        out = projection_matmul(
            self.slot_tbl, self.kblk_tbl, self.counts, x3, self.w_blocks,
            tn=self.tn, n_pad=self.N_pad, num_n_tiles=self.nn, max_nnz=self.max_nnz)
        sino = out[:B, :self.N] * self.col_scale[None, :self.N]           # per-ray dequant scale
        return sino.reshape(B, self.num_angles, self.img_size)

    __call__ = forward


if __name__ == "__main__":
    # Small, deterministic example: batch=2, img_size=16, 8 projection angles.
    SIZE = 16
    N_ANGLES = 8
    B = 2
    key = jax.random.PRNGKey(0)
    img = jax.random.normal(key, (B, SIZE, SIZE), dtype=jnp.float32)

    radon = Radon2DPallas(size=SIZE, angle=N_ANGLES)
    sino = radon(img)
    sino = jax.block_until_ready(sino)

    assert sino.shape == (B, N_ANGLES, SIZE)
    assert sino.dtype == jnp.float32

    # Reference 1: exact quantized operator (checks the Pallas plumbing: block-CSR, dequant scale).
    w_t = build_radon_matrix_t(SIZE, radon.angles)                         # [K, N] f32
    col_scale = np.asarray(radon.col_scale)[:radon.N].astype(np.float64)
    w_deq = np.clip(np.rint(w_t / col_scale[None, :].astype(np.float32)), 0, 127).astype(np.float64) \
            * col_scale[None, :]
    x_bf = np.asarray(img.reshape(B, -1).astype(jnp.bfloat16), dtype=np.float64)
    ref_q = (x_bf @ w_deq).reshape(B, N_ANGLES, SIZE)
    err_q = float(np.max(np.abs(np.asarray(sino, np.float64) - ref_q)))
    assert err_q < 1e-2, f"quantized-operator mismatch: max abs err {err_q}"

    # Reference 2: exact f32 operator (bounds the int8 + bf16 quantization error).
    ref = (np.asarray(img, np.float64).reshape(B, -1) @ w_t.astype(np.float64)).reshape(B, N_ANGLES, SIZE)
    err = float(np.max(np.abs(np.asarray(sino, np.float64) - ref)))
    assert err < 6e-2, f"f32-operator mismatch: max abs err {err}"

    print("KERNEL_OK")
</pallas_src>

<mosaic_0001>
module attributes {stable_mosaic.version = 11 : i64} {
  func.func @_proj_matmul_kernel(%arg0: i32, %arg1: i32, %arg2: memref<2x1xi32, #tpu.memory_space<smem>>, %arg3: memref<2x1xi32, #tpu.memory_space<smem>>, %arg4: memref<2xi32, #tpu.memory_space<smem>>, %arg5: memref<1x16x256xbf16, #tpu.memory_space<vmem>>, %arg6: memref<1x256x128xi8, #tpu.memory_space<vmem>>, %arg7: memref<16x128xf32, #tpu.memory_space<vmem>>) attributes {dimension_semantics = [#tpu.dimension_semantics<parallel>, #tpu.dimension_semantics<arbitrary>], iteration_bounds = array<i64: 2, 1>, scalar_prefetch = 3 : i64, scratch_operands = 0 : i64, tpu.core_type = #tpu.core_type<tc>, window_params = [{pipeline_mode = #tpu.pipeline_mode<synchronous>, transform_indices = @transform_0, window_bounds = array<i64: 1, 16, 256>}, {transform_indices = @transform_1, window_bounds = array<i64: 1, 256, 128>}, {transform_indices = @transform_2, window_bounds = array<i64: 16, 128>}]} {
    %c0_i32 = arith.constant 0 : i32
    %0 = arith.cmpi eq, %arg1, %c0_i32 : i32
    %1 = arith.extui %0 : i1 to i32
    %c0_i32_0 = arith.constant 0 : i32
    %2 = arith.cmpi ne, %1, %c0_i32_0 : i32
    scf.if %2 {
      %cst = arith.constant 0.000000e+00 : f32
      %8 = vector.broadcast %cst : f32 to vector<16x128xf32>
      %c0 = arith.constant 0 : index
      %c0_2 = arith.constant 0 : index
      %9 = vector.load %arg7[%c0, %c0_2] : memref<16x128xf32, #tpu.memory_space<vmem>>, vector<16x128xf32>
      tpu.vector_store %arg7[%c0, %c0_2], %8 {strides = array<i32>} : memref<16x128xf32, #tpu.memory_space<vmem>>, vector<16x128xf32>,
    } else {
    }
    %3 = arith.index_cast %arg0 : i32 to index
    %4 = memref.load %arg4[%3] : memref<2xi32, #tpu.memory_space<smem>>
    %5 = arith.cmpi slt, %arg1, %4 : i32
    %6 = arith.extui %5 : i1 to i32
    %c0_i32_1 = arith.constant 0 : i32
    %7 = arith.cmpi ne, %6, %c0_i32_1 : i32
    scf.if %7 {
      %8 = arith.index_cast %arg0 : i32 to index
      %9 = arith.index_cast %arg1 : i32 to index
      %10 = memref.load %arg3[%8, %9] : memref<2x1xi32, #tpu.memory_space<smem>>
      %11 = arith.index_cast %10 : i32 to index
      %c0 = arith.constant 0 : index
      %c0_2 = arith.constant 0 : index
      %12 = vector.load %arg5[%11, %c0, %c0_2] : memref<1x16x256xbf16, #tpu.memory_space<vmem>>, vector<1x16x256xbf16>
      %13 = vector.shape_cast %12 : vector<1x16x256xbf16> to vector<16x256xbf16>
      %c0_3 = arith.constant 0 : index
      %c0_4 = arith.constant 0 : index
      %c0_5 = arith.constant 0 : index
      %14 = vector.load %arg6[%c0_3, %c0_4, %c0_5] : memref<1x256x128xi8, #tpu.memory_space<vmem>>, vector<1x256x128xi8>
      %15 = vector.shape_cast %14 : vector<1x256x128xi8> to vector<256x128xi8>
      %16 = arith.sitofp %15 : vector<256x128xi8> to vector<256x128xbf16>
      %c0_6 = arith.constant 0 : index
      %c0_7 = arith.constant 0 : index
      %17 = vector.load %arg7[%c0_6, %c0_7] : memref<16x128xf32, #tpu.memory_space<vmem>>, vector<16x128xf32>
      %cst = arith.constant dense<0.000000e+00> : vector<16x128xf32>
      %18 = tpu.matmul %13, %16, %cst {dimension_numbers = #tpu.dot_dimension_numbers<[1], [0], [0], [1], [0, 0, 1, 1], [], []>} : vector<16x256xbf16>, vector<256x128xbf16>, vector<16x128xf32> -> vector<16x128xf32>
      %19 = arith.addf %17, %18 : vector<16x128xf32>
      %c0_8 = arith.constant 0 : index
      %c0_9 = arith.constant 0 : index
      %20 = vector.load %arg7[%c0_8, %c0_9] : memref<16x128xf32, #tpu.memory_space<vmem>>, vector<16x128xf32>
      tpu.vector_store %arg7[%c0_8, %c0_9], %19 {strides = array<i32>} : memref<16x128xf32, #tpu.memory_space<vmem>>, vector<16x128xf32>,
    } else {
    }
    return
  }
  func.func @transform_0(%arg0: i32, %arg1: i32, %arg2: memref<2x1xi32, #tpu.memory_space<smem>>, %arg3: memref<2x1xi32, #tpu.memory_space<smem>>, %arg4: memref<2xi32, #tpu.memory_space<smem>>) -> (i32, i32, i32) {
    %c0_i32 = arith.constant 0 : i32
    %c0_i32_0 = arith.constant 0 : i32
    %c0_i32_1 = arith.constant 0 : i32
    %c0_i32_2 = arith.constant 0 : i32
    return %c0_i32, %c0_i32_0, %c0_i32_1 : i32, i32, i32
  }
  func.func @transform_1(%arg0: i32, %arg1: i32, %arg2: memref<2x1xi32, #tpu.memory_space<smem>>, %arg3: memref<2x1xi32, #tpu.memory_space<smem>>, %arg4: memref<2xi32, #tpu.memory_space<smem>>) -> (i32, i32, i32) {
    %0 = arith.index_cast %arg0 : i32 to index
    %1 = arith.index_cast %arg1 : i32 to index
    %2 = memref.load %arg2[%0, %1] : memref<2x1xi32, #tpu.memory_space<smem>>
    %c0_i32 = arith.constant 0 : i32
    %c0_i32_0 = arith.constant 0 : i32
    %c0_i32_1 = arith.constant 0 : i32
    return %2, %c0_i32, %c0_i32_0 : i32, i32, i32
  }
  func.func @transform_2(%arg0: i32, %arg1: i32, %arg2: memref<2x1xi32, #tpu.memory_space<smem>>, %arg3: memref<2x1xi32, #tpu.memory_space<smem>>, %arg4: memref<2xi32, #tpu.memory_space<smem>>) -> (i32, i32) {
    %c0_i32 = arith.constant 0 : i32
    %c0_i32_0 = arith.constant 0 : i32
    return %c0_i32, %arg0 : i32, i32
  }
}

</mosaic_0001>

<bundles_post_ra>
// kernel: tpu_custom_call.1
= control target key start
LH: loop header
LB: loop body
LE: loop exit
PB: predicated region body
PF: predicated region fallthrough
CT: control target
= control target key end

     0   :  { %s868_s24 = smov [#allocation3]   ;;  %s869_s25 = smov [#allocation4]   ;;  %s1128_s0 = inlined_call_operand.vmem [shape: s32[2,1], index: 0, kind: input, shape index: {}]   ;;  %s1129_s3 = inlined_call_operand.hbm [shape: bf16[1,16,256], index: 3, kind: input, shape index: {}]   ;;  %s1130_s4 = inlined_call_operand.hbm [shape: s8[1,256,128], index: 4, kind: input, shape index: {}]   ;;  %s1131_s5 = inlined_call_operand.hbm [shape: f32[16,256], index: 5, kind: output, shape index: {}]   ;;  %s1132_s1 = inlined_call_operand.vmem [shape: s32[2,1], index: 1, kind: input, shape index: {}]   ;;  %s1133_s2 = inlined_call_operand.vmem [shape: s32[2], index: 2, kind: input, shape index: {}]  }
   0x1   :  { %1138 = sst [smem:[#allocation21_spill]] %s1129_s3  ;;  %s11_s20 = sshll.u32 %s1128_s0, 4  ;;  %s12_s20 = int_to_ptr.vmem [resolvable:$true] %s11_s20 }
   0x2   :  { %s16_s23 = sshll.u32 %s1132_s1, 4  ;;  %s21_s28 = sshll.u32 %s1133_s2, 4  ;;  %s17_s23 = int_to_ptr.vmem [resolvable:$true] %s16_s23  ;;  %s22_s28 = int_to_ptr.vmem [resolvable:$true] %s21_s28 }
   0x3   :  { %14 = dma.vmem_to_smem %s12_s20, 32, %s868_s24, [#allocation2] }
   0x4   :  { %19 = dma.vmem_to_smem %s17_s23, 32, %s869_s25, [#allocation2] }
   0x5   :  { %s870_s29 = smov [#allocation5]  }
   0x6   :  { %24 = dma.vmem_to_smem %s22_s28, 16, %s870_s29, [#allocation2] }
   0x7   :  { %818 = dma.done.wait [#allocation2], 80 }
   0x8   :  { %819 = vsyncadd [#allocation2], 4294967216 }
   0x9   :  { %27 = sfence }
   0xa   :  { %28 = vsyncpa [#allocation7], 0 }
   0xb   :  { %29 = vsyncpa [#allocation10], 0 }
   0xc   :  { %31 = vsyncpa [#allocation10 + $0x1], 0 }
   0xd   :  { %32 = vsyncpa [#allocation8], 0 }
   0xe   :  { %34 = vsyncpa [#allocation8 + $0x1], 0  ;;  %s917_s0 = smov 0   ;;  %s919_s1 = smov 0  }
   0xf   :  { %s921_s30 = smov 0   ;;  %s923_s6 = smov 0  }
  0x10   :  { %s925_s2 = smov 0   ;;  %s927_s7 = smov 0  }
  0x11   :  { %s929_s8 = smov 0   ;;  %s931_s9 = smov 0  }
  0x12   :  { %s933_s10 = smov 0  }
  0x13 LB: > { %1139 = sst [smem:[#allocation18_spill]] %s862_s9  ;;  %s512_s11 = sadd.s32 4294967295, %s866_s10   ;;  %s866_s10 = sphi %s933_s10, %s40_s10   ;;  %s862_s9 = sphi %s931_s9, %s1154_s9   ;;  %s858_s8 = sphi %s929_s8, %s1153_s8   ;;  %s854_s7 = sphi %s927_s7, %s1160_s7   ;;  %s850_s2 = sphi %s925_s2, %s1159_s2   ;;  %s846_s6 = sphi %s923_s6, %s1158_s6   ;;  %s842_s30 = sphi %s921_s30, %s1157_s30   ;;  %s838_s1 = sphi %s919_s1, %s1156_s1   ;;  %s834_s0 = sphi %s917_s0, %s1155_s0  }
  0x14   : > { %s513_s12 = sadd.s32 4294967294, %s866_s10   ;;  %p109_p0 = scmp.ne.s32.totalorder %s850_s2, %s846_s6 }
  0x15   : > { %p963_p1 = scmp.eq.s32.totalorder %s512_s11, 0  ;;  %p132_p2 = scmp.ne.s32.totalorder %s842_s30, %s838_s1 }
  0x16   : > { %p133_p4 = scmp.eq.s32.totalorder %s512_s11, 1  ;;  %p138_p5 = scmp.ne.s32.totalorder %s838_s1, %s834_s0 }
  0x17   : > { %p971_p3 = por %p963_p1, %p109_p0  ;;  %p139_p6 = scmp.eq.s32.totalorder %s513_s12, 1 }
  0x18   : > { %p977_p7 = por %p133_p4, %p132_p2  ;;  %p516_p8 = scmp.ge.s32.totalorder %s866_s10, 1 }
  0x19   : > { %p982_p9 = por %p139_p6, %p138_p5  ;;  %p146_p10 = scmp.lt.s32.totalorder %s866_s10, 3 }
  0x1a   : > { %s1144_s3 = sld [smem:[#allocation21_spill]]  ;;  %s871_s21 = smov [#allocation6]  }
  0x1b   : > { %p990_p11 = pnand %p516_p8, %p146_p10  ;;  %s159_s22 = sshll.u32 %s871_s21, 4  ;;  %s160_s22 = int_to_ptr.vmem [resolvable:$true] %s159_s22 }
  0x1c   : > { %s1134_s23 = smov 128   ;;  %s1135_s24 = smov 8  }
  0x1d   : > { %p558_p12 = pneg %p990_p11  ;;  %s52_s25 = sadd.s32 1, %s862_s9 }
  0x1e   : > { %p54_p2 = scmp.ge.s32.totalorder %s52_s25, 2  ;;  %s122_s26 = sadd.s32 1, %s842_s30 }
  0x1f   : > { %p559_p13 = pnand %p558_p12, %p963_p1  ;;  %s514_s27 = sshll.u32 %s862_s9, 7 }
  0x20   : > { %s157_s19 = sshll.u32 %s1144_s3, 4  ;;  %s1162_s25 = smov (%p54_p2, %s52_s25), 0  ;;  %s158_s19 = int_to_ptr.hbm [resolvable:$true] %s157_s19 }
  0x21   : > { %561 = dma.hbm_to_vmem [thread:$0]  (!%p559_p13), %s158_s19, 256, %s160_s22, [#allocation7], %s1134_s23, %s1134_s23, %s1135_s24  }
  0x22   : > { %1146 = sst [smem:[#allocation19_spill]] %s1162_s25  ;;  %p103_p4 = scmp.ne.s32.totalorder %s854_s7, %s850_s2 }
  0x23   : > { %s84_s28 = sld [smem:[#allocation3 + %s514_s27]]  ;;  %s515_s29 = sshll.u32 %s1162_s25, 7 }
  0x24   : > { %s119_s6 = ssub.s32 %s862_s9, %s1162_s25  ;;  %s92_s11 = sld [smem:[#allocation3 + %s515_s29]] }
  0x25   : > { %p104_p5 = scmp.eq.s32.totalorder %s866_s10, 0  ;;  %p120_p6 = scmp.eq.s32.totalorder %s119_s6, 0 }
  0x26   : > { %s173_s12 = sand.u32 1, %s854_s7   ;;  %s96_s18 = sadd.s32 1, %s854_s7 }
  0x27   : > { %s1015_s17 = scalar_select %p120_p6, %s842_s30, %s122_s26  }
  0x28   : > { %p105_p8 = por %p104_p5, %p103_p4  ;;  %p573_p10 = scmp.lt.s32.totalorder %s866_s10, 2 }
  0x29   : > { %1147 = sst [smem:[#allocation20_spill]] %s1015_s17  ;;  %s519_s21 = sshll.u32 %s173_s12, 6 }
  0x2a   : > { %s93_s19 = ssub.s32 %s84_s28, %s92_s11  ;;  %p1019_p13 = pnand %p573_p10, %p105_p8 }
  0x2b   : > { %p94_p12 = scmp.eq.s32.totalorder %s93_s19, 0  ;;  %s1164_s27 = smov (!%p105_p8, %s514_s27), 0 }
  0x2c   : > { %s550_s23 = scalar_select %p105_p8, [#allocation3], [#allocation12] }
  0x2d   : > { %s1024_s24 = scalar_select %p94_p12, %s854_s7, %s96_s18  }
  0x2e   : > { %s1166_s23 = smov (!%p573_p10, %s550_s23), [#allocation13]  ;;  %s1168_s27 = smov (!%p573_p10, %s1164_s27), 0 }
  0x2f   : > { %s185_s29 = sld [smem:[%s1166_s23 + %s1168_s27]]  ;;  %s177_s26 = scalar_lea.vmem [#allocation9], %s519_s21 }
  0x30   : > { %s193_s6 = sshll.u32 %s177_s26, 4  ;;  %s174_s19 = scalar_lea.sflag [#allocation10], %s173_s12  ;;  %s194_s6 = int_to_ptr.vmem [resolvable:$true] %s193_s6 }
  0x31   : > { %p728_p4 = pneg %p1019_p13  ;;  %s731_s21 = scalar_lea.hbm %s1130_s4, 64 }
  0x35   : > { %s544_s3 = sshll.u32 %s185_s29, 6 }
  0x36   : > { %s190_s28 = scalar_lea.hbm %s1130_s4, %s544_s3 }
  0x37   : > { %s191_s11 = sshll.u32 %s190_s28, 4  ;;  %s192_s11 = int_to_ptr.hbm [resolvable:$true] %s191_s11 }
  0x38   : > { %s724_s17 = sshra.s32 %s192_s11, 4  ;;  %s725_s17 = int_to_ptr.hbm [resolvable:$true] %s724_s17 }
  0x39   : > { %s726_s18 = scalar_lea.hbm %s725_s17, 64  ;;  %p732_p8 = scmp.lt.s32.totalorder %s725_s17, %s1130_s4 }
  0x3a   : > { %p727_p2 = scmp.ne.s32.totalorder %s725_s17, %s726_s18  ;;  %p733_p10 = scmp.lt.s32.totalorder %s731_s21, %s726_s18 }
  0x3c   : > { %p729_p5 = pnand %p728_p4, %p727_p2  ;;  %p734_p12 = por %p733_p10, %p732_p8 }
  0x3e   : > { %p730_p6 = pneg %p729_p5 }
  0x40   : > { %p735_p0 = pnand %p734_p12, %p730_p6 }
  0x42   : > { %738 = shalt.err (!%p735_p0)
}
  0x43   : > { %s1149_s3 = smov 8   ;;  %s1150_s9 = smov 128  }
  0x44   : > { %567 = dma.hbm_to_vmem [thread:$0]  (!%p1019_p13), %s192_s11, 1024, %s194_s6, %s174_s19, %s1150_s9, %s1150_s9, %s1149_s3  }
  0x45   : > { %205 = sbr.rel (%p990_p11) target bundleno = 287 (0x11f), region = 28 }
  0x4a   : > { %821 = dma.done.wait (%p963_p1), [#allocation7], 256  }
  0x4b   : > { %823 = vsyncadd (%p963_p1), [#allocation7], 4294967040  ;;  %s212_s25 = sand.u32 1, %s850_s2  }
  0x4c   : > { %s525_s12 = sshll.u32 %s212_s25, 6  ;;  %s213_s17 = scalar_lea.sflag [#allocation10], %s212_s25 }
  0x4d   : > { %s1049_s28 = scalar_lea.vmem [#allocation9], %s525_s12 }
  0x4e   : > { %825 = dma.done.wait (%p971_p3), %s213_s17, 1024  }
  0x4f   : > { %827 = vsyncadd (%p971_p3), %s213_s17, 4294966272  ;;  %s235_s20 = sand.u32 1, %s838_s1   ;;  %s252_s22 = sld [smem:[#allocation5 + %s858_s8]]  ;;  %v874_v0 = vmov 0.0  }
  0x50   : > { %s526_s13 = sshll.u32 %s235_s20, 4 }
  0x51   : > { %s1059_s6 = scalar_lea.vmem [#allocation11], %s526_s13 }
  0x52   : > { %250 = vst [vmem:[%s1059_s6] sm:$0xff] %v874_v0 }
  0x53   : > { %251 = vst [vmem:[%s1059_s6 + $0x8] sm:$0xff] %v874_v0 }
  0x55   : > { %p528_p1 = scmp.le.s32.totalorder %s252_s22, 0 }
  0x56   : > { %s529_s14 = sshll.u32 (!%p528_p1), %s858_s8, 7 }
  0x57   : > { %256 = sbr.rel (%p528_p1) target bundleno = 270 (0x10e), region = 44  ;;  %s1072_s11 = sld [smem:[#allocation4 + %s529_s14]] (!%p528_p1) }
  0x5c   : > { %v273_v1 = vld [vmem:[%s1049_s28 + $0x18] sm:$0xff]  ;;  %v272_v11 = vld [vmem:[%s1049_s28 + $0x10] sm:$0xff]  ;;  %v271_v33 = vld [vmem:[%s1049_s28 + $0x8] sm:$0xff] }
  0x5d   : > { %v277_v2 = vld [vmem:[%s1049_s28 + $0x38] sm:$0xff]  ;;  %v292_v3 = vunpack.c.2.s8 %v273_v1  ;;  %v293_v4 = vunpack.c.3.s8 %v273_v1  ;;  %v290_v7 = vunpack.c.0.s8 %v273_v1  ;;  %v291_v8 = vunpack.c.1.s8 %v273_v1  ;;  %v276_v16 = vld [vmem:[%s1049_s28 + $0x30] sm:$0xff]  ;;  %v275_v38 = vld [vmem:[%s1049_s28 + $0x28] sm:$0xff]  ;;  %s545_s19 = sshll.u32 %s1072_s11, 4 }
  0x5e   : > { %v308_v5 = vunpack.c.2.s8 %v277_v2  ;;  %v309_v6 = vunpack.c.3.s8 %v277_v2  ;;  %v306_v9 = vunpack.c.0.s8 %v277_v2  ;;  %v307_v10 = vunpack.c.1.s8 %v277_v2  ;;  %v270_v55 = vld [vmem:[%s1049_s28] sm:$0xff]  ;;  %s267_s18 = scalar_lea.vmem [#allocation6], %s545_s19 }
  0x5f   : > { %v324_v12 = vcvt.s32.f32 %v292_v3  ;;  %v325_v13 = vcvt.s32.f32 %v293_v4  ;;  %v322_v17 = vcvt.s32.f32 %v290_v7  ;;  %v323_v18 = vcvt.s32.f32 %v291_v8  ;;  %v274_v60 = vld [vmem:[%s1049_s28 + $0x20] sm:$0xff] }
  0x60   : > { %v340_v14 = vcvt.s32.f32 %v308_v5  ;;  %v341_v15 = vcvt.s32.f32 %v309_v6  ;;  %v338_v19 = vcvt.s32.f32 %v306_v9  ;;  %v339_v20 = vcvt.s32.f32 %v307_v10 }
  0x61   : > { %v349_v21 = vpack.c.bf16 %v325_v13, %v324_v12  ;;  %v288_v23 = vunpack.c.2.s8 %v272_v11  ;;  %v289_v24 = vunpack.c.3.s8 %v272_v11  ;;  %v348_v25 = vpack.c.bf16 %v323_v18, %v322_v17 }
  0x62   : > { %v357_v22 = vpack.c.bf16 %v341_v15, %v340_v14  ;;  %v356_v26 = vpack.c.bf16 %v339_v20, %v338_v19  ;;  %v304_v27 = vunpack.c.2.s8 %v276_v16  ;;  %v305_v28 = vunpack.c.3.s8 %v276_v16 }
  0x63   : > { %370 = vmatpush.bf16.msra.mxu0 %v349_v21  ;;  %v320_v29 = vcvt.s32.f32 %v288_v23  ;;  %v321_v30 = vcvt.s32.f32 %v289_v24  ;;  %v286_v31 = vunpack.c.0.s8 %v272_v11  ;;  %v287_v32 = vunpack.c.1.s8 %v272_v11  ;;  %v534_v23 = vld [vmem:[%s267_s18] sm:$0xf] }
  0x64   : > { %384 = vmatpush.bf16.msra.mxu1 %v357_v22  ;;  %v336_v34 = vcvt.s32.f32 %v304_v27  ;;  %v337_v35 = vcvt.s32.f32 %v305_v28  ;;  %v302_v36 = vunpack.c.0.s8 %v276_v16  ;;  %v303_v37 = vunpack.c.1.s8 %v276_v16  ;;  %v546_v27 = vld [vmem:[%s267_s18 + $0x4] sm:$0xf]  ;;  %v536_v28 = vld [vmem:[%s267_s18 + $0x8] sm:$0xf0] }
  0x65   : > { %v347_v39 = vpack.c.bf16 %v321_v30, %v320_v29  ;;  %v318_v40 = vcvt.s32.f32 %v286_v31  ;;  %v319_v42 = vcvt.s32.f32 %v287_v32  ;;  %v284_v44 = vunpack.c.2.s8 %v271_v33  ;;  %v358_v32 = vld [vmem:[%s1059_s6] sm:$0xff] }
  0x66   : > { %v355_v41 = vpack.c.bf16 %v337_v35, %v336_v34  ;;  %v334_v43 = vcvt.s32.f32 %v302_v36  ;;  %v335_v45 = vcvt.s32.f32 %v303_v37  ;;  %v285_v46 = vunpack.c.3.s8 %v271_v33  ;;  %v359_v37 = vld [vmem:[%s1059_s6 + $0x8] sm:$0xff] }
  0x67   : > { %371 = vmatpush.bf16.msra.mxu0 %v348_v25  ;;  %v300_v47 = vunpack.c.2.s8 %v275_v38  ;;  %v301_v48 = vunpack.c.3.s8 %v275_v38  ;;  %v282_v49 = vunpack.c.0.s8 %v271_v33  ;;  %v283_v50 = vunpack.c.1.s8 %v271_v33 }
  0x68   : > { %385 = vmatpush.bf16.msra.mxu1 %v356_v26  ;;  %v346_v51 = vpack.c.bf16 %v319_v42, %v318_v40  ;;  %v316_v52 = vcvt.s32.f32 %v284_v44  ;;  %v298_v53 = vunpack.c.0.s8 %v275_v38  ;;  %v299_v54 = vunpack.c.1.s8 %v275_v38  ;;  %v547_v26 = vld [vmem:[%s267_s18 + $0x4] sm:$0xf0] }
  0x69   : > { %v354_v56 = vpack.c.bf16 %v335_v45, %v334_v43  ;;  %v317_v57 = vcvt.s32.f32 %v285_v46  ;;  %v332_v58 = vcvt.s32.f32 %v300_v47  ;;  %v333_v59 = vcvt.s32.f32 %v301_v48 }
  0x6a   : > { %v314_v61 = vcvt.s32.f32 %v282_v49  ;;  %v315_v62 = vcvt.s32.f32 %v283_v50  ;;  %v280_v63 = vunpack.c.2.s8 %v270_v55  ;;  %v330_v0 = vcvt.s32.f32 %v298_v53 }
  0x6b   : > { %372 = vmatpush.bf16.msra.mxu0 %v347_v39  ;;  %v331_v1 = vcvt.s32.f32 %v299_v54  ;;  %v281_v2 = vunpack.c.3.s8 %v270_v55  ;;  %v345_v3 = vpack.c.bf16 %v317_v57, %v316_v52  ;;  %v353_v4 = vpack.c.bf16 %v333_v59, %v332_v58 }
  0x6c   : > { %386 = vmatpush.bf16.msra.mxu1 %v355_v41  ;;  %v296_v5 = vunpack.c.2.s8 %v274_v60  ;;  %v297_v6 = vunpack.c.3.s8 %v274_v60  ;;  %v344_v7 = vpack.c.bf16 %v315_v62, %v314_v61  ;;  %v312_v8 = vcvt.s32.f32 %v280_v63 }
  0x6d   : > { %v352_v9 = vpack.c.bf16 %v331_v1, %v330_v0  ;;  %v313_v10 = vcvt.s32.f32 %v281_v2  ;;  %v278_v11 = vunpack.c.0.s8 %v270_v55  ;;  %v279_v12 = vunpack.c.1.s8 %v270_v55 }
  0x6e   : > { %v328_v13 = vcvt.s32.f32 %v296_v5  ;;  %v329_v14 = vcvt.s32.f32 %v297_v6  ;;  %v294_v15 = vunpack.c.0.s8 %v274_v60  ;;  %v295_v16 = vunpack.c.1.s8 %v274_v60 }
  0x6f   : > { %373 = vmatpush.bf16.msra.mxu0 %v346_v51  ;;  %v343_v17 = vpack.c.bf16 %v313_v10, %v312_v8  ;;  %v310_v18 = vcvt.s32.f32 %v278_v11  ;;  %v311_v20 = vcvt.s32.f32 %v279_v12  ;;  %v535_v29 = vor.u32 %v547_v26, %v534_v23 }
  0x70   : > { %387 = vmatpush.bf16.msra.mxu1 %v354_v56  ;;  %v351_v19 = vpack.c.bf16 %v329_v14, %v328_v13  ;;  %v326_v21 = vcvt.s32.f32 %v294_v15  ;;  %v327_v22 = vcvt.s32.f32 %v295_v16  ;;  %v539_v30 = vor.u32 %v546_v27, %v536_v28 }
  0x71   : > { %v342_v24 = vpack.c.bf16 %v311_v20, %v310_v18 }
  0x72   : > { %v350_v25 = vpack.c.bf16 %v327_v22, %v326_v21 }
  0x73   : > { %374 = vmatpush.bf16.msra.mxu0 %v345_v3 }
  0x74   : > { %388 = vmatpush.bf16.msra.mxu1 %v353_v4 }
  0x77   : > { %375 = vmatpush.bf16.msra.mxu0 %v344_v7 }
  0x78   : > { %389 = vmatpush.bf16.msra.mxu1 %v352_v9 }
  0x7b   : > { %376 = vmatpush.bf16.msra.mxu0 %v343_v17 }
  0x7c   : > { %390 = vmatpush.bf16.msra.mxu1 %v351_v19 }
  0x7f   : > { %377 = vmatpush.bf16.msra.mxu0 %v342_v24 }
  0x80   : > { %391 = vmatpush.bf16.msra.mxu1 %v350_v25 }
  0x82   : > { %378 = vmatmul.bf16.vlgmr.msra.gmra.mxu0 %v535_v29 }
  0x83   : > { %392 = vmatmul.bf16.vlgmr.msra.gmra.mxu1 %v539_v30 }
  0xff   : > { %v379_v31 = vpop.f32.mrf.mxu0 }
 0x100   : > { %v393_v33 = vpop.f32.mrf.mxu1 }
 0x101   : > { %v394_v34 = vadd.f32 %v393_v33, %v379_v31 }
 0x103   : > { %v398_v35 = vadd.f32 %v394_v34, %v358_v32 }
 0x105   : > { %400 = vst [vmem:[%s1059_s6] sm:$0xff] %v398_v35 }
 0x107   : > { %v381_v36 = vpop.f32.mrf.mxu0 }
 0x108   : > { %v395_v38 = vpop.f32.mrf.mxu1 }
 0x109   : > { %v396_v39 = vadd.f32 %v395_v38, %v381_v36 }
 0x10b   : > { %v399_v40 = vadd.f32 %v396_v39, %v359_v37 }
 0x10d   : > { %401 = vst [vmem:[%s1059_s6 + $0x8] sm:$0xff] %v399_v40 }
 0x10e PF: > { %s541_s23 = sshll.u32 %s858_s8, 3  ;;  %s414_s26 = sshll.u32 %s1059_s6, 4  ;;  %s415_s26 = int_to_ptr.vmem [resolvable:$true] %s414_s26 }
 0x10f   : > { %s413_s29 = scalar_lea.hbm %s1131_s5, %s541_s23  ;;  %s403_s9 = scalar_lea.sflag [#allocation8], %s235_s20 }
 0x110   : > { %s416_s3 = sshll.u32 %s413_s29, 4  ;;  %s774_s8 = scalar_lea.hbm %s1131_s5, 32  ;;  %s417_s3 = int_to_ptr.hbm [resolvable:$true] %s416_s3 }
 0x111   : > { %s768_s25 = sshra.s32 %s417_s3, 4  ;;  %s769_s25 = int_to_ptr.hbm [resolvable:$true] %s768_s25 }
 0x112   : > { %s770_s12 = scalar_lea.hbm %s769_s25, 16  ;;  %p775_p13 = scmp.lt.s32.totalorder %s769_s25, %s1131_s5 }
 0x113   : > { %p771_p3 = scmp.ne.s32.totalorder %s769_s25, %s770_s12  ;;  %p776_p2 = scmp.lt.s32.totalorder %s774_s8, %s770_s12 }
 0x115   : > { %p772_p11 = pnand %p771_p3, %p977_p7  ;;  %p777_p4 = por %p776_p2, %p775_p13 }
 0x117   : > { %p773_p0 = pneg %p772_p11 }
 0x119   : > { %p778_p5 = pnand %p777_p4, %p773_p0 }
 0x11b   : > { %781 = shalt.err (!%p778_p5)
}
 0x11c   : > { %s875_s20 = smov 128   ;;  %s876_s6 = smov 256  }
 0x11d   : > { %s877_s14 = smov 8  }
 0x11e   : > { %556 = dma.vmem_to_hbm [thread:$0]  (%p977_p7), %s415_s26, 256, %s417_s3, %s403_s9, %s875_s20, %s876_s6, %s877_s14  }
 0x11f PF: > { %s431_s11 = sand.u32 1, %s834_s0   ;;  %p1151_p6 = scmp.ge.s32.totalorder %s866_s10, 2 }
 0x120   : > { %s432_s19 = scalar_lea.sflag [#allocation8], %s431_s11 }
 0x121   : > { %p569_p8 = pnand %p1151_p6, %p982_p9 }
 0x123   : > { %p570_p10 = pneg %p569_p8 }
 0x125   : > { %829 = dma.done.wait (%p570_p10), %s432_s19, 256  }
 0x126   : > { %831 = vsyncadd (%p570_p10), %s432_s19, 4294967040  ;;  %s40_s10 = sadd.s32 1, %s866_s10   ;;  %s1152_s18 = sld [smem:[#allocation20_spill]] }
 0x127   : > { %p37_p12 = scmp.ge.s32.totalorder %s40_s10, 4   ;;  %s1153_s8 = sld [smem:[#allocation18_spill]] }
 0x128   : > { %s1154_s9 = sld [smem:[#allocation19_spill]]  ;;  %s1155_s0 = smov %s838_s1 }
 0x129   : > { %s1156_s1 = smov %s842_s30  ;;  %s1158_s6 = smov %s850_s2 }
 0x12a   : > { %s1159_s2 = smov %s854_s7  ;;  %s1160_s7 = smov %s1024_s24 }
 0x12b   :  { %39 = sbr.rel (!%p37_p12) target bundleno = 19 (0x13), region = 87 }
 0x12c   : > { %s1157_s30 = smov %s1152_s18 }
 0x130   :  { %438 = vsyncpa [#allocation7], 1 }
 0x131   :  { %440 = vsyncpa [#allocation7 + $0x1], 1 }
 0x132   :  { %441 = vsyncpa [#allocation10], 1 }
 0x133   :  { %443 = vsyncpa [#allocation10 + $0x1], 1 }
 0x134   :  { %444 = vsyncpa [#allocation8], 1 }
 0x135   :  { %446 = vsyncpa [#allocation8 + $0x1], 1 }

</bundles_post_ra>
